<compile_context>
chip_gen: v7x
topology: tpu7x:2x2x1
jax: 0.10.0
libtpu: 0.0.40
codegen_flags: <defaults>
</compile_context>

<pallas_src>
import functools

import jax
import jax.numpy as jnp
from jax.experimental import pallas as pl
from jax.experimental.pallas import tpu as pltpu

EPS = 1e-5
LEAKY_SLOPE = 0.01
LANES = 128

_VMEM_CAP_CACHE = [None]


def _round_up(x, m):
    return ((x + m - 1) // m) * m


def _vmem_cap_bytes():
    """~75% of the chip's VMEM (v5e/v6e: 128 MiB, v7x: 64 MiB); safe fallback."""
    if _VMEM_CAP_CACHE[0] is None:
        try:
            _VMEM_CAP_CACHE[0] = int(pltpu.get_tpu_info().vmem_capacity_bytes) * 3 // 4
        except Exception:
            _VMEM_CAP_CACHE[0] = 48 << 20
    return _VMEM_CAP_CACHE[0]


def _pick_tile_h(h_pad, requested=512):
    """Largest mult-of-128 divisor of h_pad <= requested; prefer mult of 256.
    Capped at h_pad//2 when possible so the parallel grid axis has >= 2 tiles
    (v7x has 2 TensorCores; extra tiles are free on single-TC chips)."""
    cap = min(requested, h_pad)
    if h_pad >= 2 * LANES:
        cap = min(cap, h_pad // 2)
    best = None
    for nb in range(max(cap // LANES, 1), 0, -1):
        t = nb * LANES
        if h_pad % t == 0:
            if t % 256 == 0:
                return t            # fills the 256-wide MXU on v6e/v7x
            if best is None:
                best = t
    return best if best is not None else LANES


def _pick_tile_k(d_in, max_tk=1024):
    """K tile: full D_in when small/awkward, else a mult-of-128 divisor <= max_tk."""
    if d_in <= max_tk or d_in % LANES != 0:
        return d_in
    best = None
    for nb in range(max_tk // LANES, 0, -1):
        t = nb * LANES
        if d_in % t == 0:
            if t % 256 == 0:
                return t
            if best is None:
                best = t
    return best if best is not None else d_in


def prepare_linear_block_params(w, b, gamma, beta):
    """One-time parameter prep (outside the per-step path).

    w: (H, D_in) PyTorch-layout Linear weight; b: (H,) Linear bias (dropped:
    training-mode BN's mean subtraction cancels it exactly); gamma/beta: (H,).
    Returns (wt_bf (D_in, H_pad) bf16, gb (2, H_pad) f32, h).
    """
    del b  # cancelled by batch-mean subtraction in training-mode BatchNorm1d
    h, d_in = w.shape
    h_pad = _round_up(h, LANES)
    wt_bf = jnp.zeros((d_in, h_pad), jnp.bfloat16)
    wt_bf = wt_bf.at[:, :h].set(jnp.transpose(w).astype(jnp.bfloat16))
    gb = jnp.zeros((2, h_pad), jnp.float32)
    gb = gb.at[0, :h].set(gamma.astype(jnp.float32))
    gb = gb.at[1, :h].set(beta.astype(jnp.float32))
    return wt_bf, gb, h


def linear_block_kernel(x_ref, wt_ref, gb_ref, o_ref, acc_ref):
    k = pl.program_id(1)

    @pl.when(k == 0)
    def _():
        acc_ref[...] = jnp.zeros_like(acc_ref)

    # Linear (bias-free): cast x to bf16 in-kernel (VPU has slack), f32 MXU acc.
    acc_ref[...] += jnp.dot(
        x_ref[...].astype(jnp.bfloat16), wt_ref[...],
        preferred_element_type=jnp.float32)

    @pl.when(k == pl.num_programs(1) - 1)
    def _():
        # BatchNorm1d, training mode: biased batch stats, shifted two-pass var.
        y = acc_ref[...]                                   # (N, TH) f32
        inv_n = jnp.float32(1.0 / y.shape[0])
        mean = jnp.sum(y, axis=0, keepdims=True) * inv_n   # (1, TH)
        d = y - mean
        var = jnp.sum(d * d, axis=0, keepdims=True) * inv_n
        gamma = gb_ref[0:1, :]
        beta = gb_ref[1:2, :]
        scale = gamma * jax.lax.rsqrt(var + EPS)           # EUP rsqrt (free slot)
        # Fused BN affine + LeakyReLU epilogue.
        z = d * scale + beta
        o_ref[...] = jnp.where(z >= 0, z, LEAKY_SLOPE * z).astype(o_ref.dtype)


@functools.partial(jax.jit,
                   static_argnames=("h", "tile_h", "tile_k_max", "out_dtype"))
def linear_block_pallas(x, wt_bf, gb, h, *, tile_h=512, tile_k_max=1024,
                        out_dtype=jnp.float32):
    """x: (N, D_in) any float dtype; wt_bf/gb from prepare_linear_block_params.
    Returns (N, H) out_dtype (LeakyReLU(BN(Linear(x))), training-mode BN)."""
    n, d_in = x.shape
    h_pad = wt_bf.shape[1]

    th = _pick_tile_h(h_pad, tile_h)
    tk = _pick_tile_k(d_in, tile_k_max)
    grid_h = h_pad // th
    grid_k = d_in // tk

    # VMEM budget: double-buffer only the blocks whose index changes per step.
    x_bytes = jnp.dtype(x.dtype).itemsize
    o_bytes = jnp.dtype(out_dtype).itemsize
    need = (2 * n * tk * x_bytes          # x tile (varies along k)
            + 2 * tk * th * 2             # bf16 weight tile (varies along j, k)
            + 2 * 2 * th * 4              # gamma/beta tile (varies along j)
            + 2 * n * th * o_bytes        # output tile (varies along j)
            + n * th * 4                  # f32 accumulator scratch
            + (2 << 20))                  # headroom
    vmem_bytes = int(min(max(need, 4 << 20), _vmem_cap_bytes()))

    out = pl.pallas_call(
        linear_block_kernel,
        out_shape=jax.ShapeDtypeStruct((n, h_pad), out_dtype),
        grid=(grid_h, grid_k),
        in_specs=[
            pl.BlockSpec((n, tk), lambda j, k: (0, k)),     # x: K tile
            pl.BlockSpec((tk, th), lambda j, k: (k, j)),    # weight tile
            pl.BlockSpec((2, th), lambda j, k: (0, j)),     # packed gamma/beta
        ],
        out_specs=pl.BlockSpec((n, th), lambda j, k: (0, j)),
        scratch_shapes=[pltpu.VMEM((n, th), jnp.float32)],
        compiler_params=pltpu.CompilerParams(
            dimension_semantics=("parallel", "arbitrary"),
            vmem_limit_bytes=vmem_bytes,
        ),
    )(x, wt_bf, gb)

    return out if h == h_pad else out[:, :h]


@functools.partial(jax.jit, static_argnames=("h",))
def _linear_block_xla(x, wt_bf, gb, h):
    """Plain-XLA fallback (same math) for problems too small for pallas_call."""
    y = jnp.dot(x.astype(jnp.bfloat16), wt_bf[:, :h],
                preferred_element_type=jnp.float32)
    mean = jnp.mean(y, axis=0, keepdims=True)
    d = y - mean
    var = jnp.mean(d * d, axis=0, keepdims=True)
    z = d * (gb[0:1, :h] * jax.lax.rsqrt(var + EPS)) + gb[1:2, :h]
    return jnp.where(z >= 0, z, LEAKY_SLOPE * z)


def linear_block(x, wt_bf, gb, h, *, min_pallas_flops=1 << 22, **kw):
    """Dispatcher: tiny problems go to XLA (per-call overhead dominates)."""
    n, d_in = x.shape
    if 2 * n * d_in * h < min_pallas_flops:
        return _linear_block_xla(x, wt_bf, gb, h)
    return linear_block_pallas(x, wt_bf, gb, h, **kw)


if __name__ == "__main__":
    # Small shapes implied by the module: LinearBlock(hidden_size=32, input_size=64)
    batch, input_size, hidden_size = 8, 64, 32

    key = jax.random.PRNGKey(0)
    kx, kw, kb = jax.random.split(key, 3)

    x = jax.random.normal(kx, (batch, input_size), dtype=jnp.float32)

    # PyTorch-style uniform(-1/sqrt(fan_in), 1/sqrt(fan_in)) init.
    bound = 1.0 / (input_size ** 0.5)
    w = jax.random.uniform(kw, (hidden_size, input_size),
                           minval=-bound, maxval=bound, dtype=jnp.float32)
    b = jax.random.uniform(kb, (hidden_size,),
                           minval=-bound, maxval=bound, dtype=jnp.float32)
    gamma = jnp.ones((hidden_size,), dtype=jnp.float32)   # BN weight init
    beta = jnp.zeros((hidden_size,), dtype=jnp.float32)   # BN bias init

    # One-time parameter prep (transpose, bf16 cast, pad, gamma/beta pack).
    wt_bf, gb, h = prepare_linear_block_params(w, b, gamma, beta)

    # Call the Pallas path directly so the kernel itself is exercised
    # (linear_block() would route these tiny shapes to XLA).
    out = linear_block_pallas(x, wt_bf, gb, h)
    jax.block_until_ready(out)

    # Pure-JAX reference with the same bf16 matmul rounding. The Linear bias IS
    # applied here; training-mode BN cancels it, so the kernel may drop it.
    xb = x.astype(jnp.bfloat16).astype(jnp.float32)
    wb = jnp.transpose(w).astype(jnp.bfloat16).astype(jnp.float32)
    y_ref = xb @ wb + b
    mu = jnp.mean(y_ref, axis=0, keepdims=True)
    va = jnp.mean((y_ref - mu) ** 2, axis=0, keepdims=True)
    z_ref = gamma * (y_ref - mu) / jnp.sqrt(va + EPS) + beta
    ref = jnp.where(z_ref >= 0, z_ref, LEAKY_SLOPE * z_ref)
    assert out.shape == (batch, hidden_size)
    assert jnp.allclose(out, ref, atol=2e-3, rtol=2e-3), "mismatch vs reference"

    # TODO(synk): PyTorch BatchNorm1d running_mean/running_var updates are not
    # emitted; add (1, H) mean/var outputs if training-state parity is needed.

    print("KERNEL_OK")
</pallas_src>

<mosaic_0001>
module attributes {stable_mosaic.version = 11 : i64} {
  func.func @linear_block_kernel(%arg0: i32, %arg1: i32, %arg2: memref<8x64xf32, #tpu.memory_space<vmem>>, %arg3: memref<64x128xbf16, #tpu.memory_space<vmem>>, %arg4: memref<2x128xf32, #tpu.memory_space<vmem>>, %arg5: memref<8x128xf32, #tpu.memory_space<vmem>>, %arg6: memref<8x128xf32, #tpu.memory_space<vmem>>) attributes {dimension_semantics = [#tpu.dimension_semantics<parallel>, #tpu.dimension_semantics<arbitrary>], iteration_bounds = array<i64: 1, 1>, scalar_prefetch = 0 : i64, scratch_operands = 1 : i64, tpu.core_type = #tpu.core_type<tc>, window_params = [{transform_indices = @transform_0, window_bounds = array<i64: 8, 64>}, {transform_indices = @transform_1, window_bounds = array<i64: 64, 128>}, {transform_indices = @transform_2, window_bounds = array<i64: 2, 128>}, {transform_indices = @transform_3, window_bounds = array<i64: 8, 128>}]} {
    %c0_i32 = arith.constant 0 : i32
    %0 = arith.cmpi eq, %arg1, %c0_i32 : i32
    %1 = arith.extui %0 : i1 to i32
    %c0_i32_0 = arith.constant 0 : i32
    %2 = arith.cmpi ne, %1, %c0_i32_0 : i32
    scf.if %2 {
      %cst_10 = arith.constant 0.000000e+00 : f32
      %13 = vector.broadcast %cst_10 : f32 to vector<8x128xf32>
      %c0_11 = arith.constant 0 : index
      %c0_12 = arith.constant 0 : index
      %14 = vector.load %arg6[%c0_11, %c0_12] : memref<8x128xf32, #tpu.memory_space<vmem>>, vector<8x128xf32>
      tpu.vector_store %arg6[%c0_11, %c0_12], %13 {strides = array<i32>} : memref<8x128xf32, #tpu.memory_space<vmem>>, vector<8x128xf32>,
    } else {
    }
    %c0 = arith.constant 0 : index
    %c0_1 = arith.constant 0 : index
    %3 = vector.load %arg6[%c0, %c0_1] : memref<8x128xf32, #tpu.memory_space<vmem>>, vector<8x128xf32>
    %c0_2 = arith.constant 0 : index
    %c0_3 = arith.constant 0 : index
    %4 = vector.load %arg2[%c0_2, %c0_3] : memref<8x64xf32, #tpu.memory_space<vmem>>, vector<8x64xf32>
    %5 = arith.truncf %4 : vector<8x64xf32> to vector<8x64xbf16>
    %c0_4 = arith.constant 0 : index
    %c0_5 = arith.constant 0 : index
    %6 = vector.load %arg3[%c0_4, %c0_5] : memref<64x128xbf16, #tpu.memory_space<vmem>>, vector<64x128xbf16>
    %cst = arith.constant dense<0.000000e+00> : vector<8x128xf32>
    %7 = tpu.matmul %5, %6, %cst {dimension_numbers = #tpu.dot_dimension_numbers<[1], [0], [0], [1], [0, 0, 1, 1], [], []>} : vector<8x64xbf16>, vector<64x128xbf16>, vector<8x128xf32> -> vector<8x128xf32>
    %8 = arith.addf %3, %7 : vector<8x128xf32>
    %c0_6 = arith.constant 0 : index
    %c0_7 = arith.constant 0 : index
    %9 = vector.load %arg6[%c0_6, %c0_7] : memref<8x128xf32, #tpu.memory_space<vmem>>, vector<8x128xf32>
    tpu.vector_store %arg6[%c0_6, %c0_7], %8 {strides = array<i32>} : memref<8x128xf32, #tpu.memory_space<vmem>>, vector<8x128xf32>,
    %c0_i32_8 = arith.constant 0 : i32
    %10 = arith.cmpi eq, %arg1, %c0_i32_8 : i32
    %11 = arith.extui %10 : i1 to i32
    %c0_i32_9 = arith.constant 0 : i32
    %12 = arith.cmpi ne, %11, %c0_i32_9 : i32
    scf.if %12 {
      %c0_10 = arith.constant 0 : index
      %c0_11 = arith.constant 0 : index
      %13 = vector.load %arg6[%c0_10, %c0_11] : memref<8x128xf32, #tpu.memory_space<vmem>>, vector<8x128xf32>
      %cst_12 = arith.constant dense<0.000000e+00> : vector<128xf32>
      %14 = vector.multi_reduction <add>, %13, %cst_12 [0] : vector<8x128xf32> to vector<128xf32>
      %15 = vector.shape_cast %14 : vector<128xf32> to vector<1x128xf32>
      %cst_13 = arith.constant 1.250000e-01 : f32
      %16 = vector.broadcast %cst_13 : f32 to vector<1x128xf32>
      %17 = arith.mulf %15, %16 : vector<1x128xf32>
      %18 = vector.broadcast %17 : vector<1x128xf32> to vector<8x128xf32>
      %19 = arith.subf %13, %18 : vector<8x128xf32>
      %20 = arith.mulf %19, %19 : vector<8x128xf32>
      %cst_14 = arith.constant dense<0.000000e+00> : vector<128xf32>
      %21 = vector.multi_reduction <add>, %20, %cst_14 [0] : vector<8x128xf32> to vector<128xf32>
      %22 = vector.shape_cast %21 : vector<128xf32> to vector<1x128xf32>
      %cst_15 = arith.constant 1.250000e-01 : f32
      %23 = vector.broadcast %cst_15 : f32 to vector<1x128xf32>
      %24 = arith.mulf %22, %23 : vector<1x128xf32>
      %c0_16 = arith.constant 0 : index
      %c0_17 = arith.constant 0 : index
      %25 = vector.load %arg4[%c0_16, %c0_17] : memref<2x128xf32, #tpu.memory_space<vmem>>, vector<1x128xf32>
      %c1 = arith.constant 1 : index
      %c0_18 = arith.constant 0 : index
      %26 = vector.load %arg4[%c1, %c0_18] : memref<2x128xf32, #tpu.memory_space<vmem>>, vector<1x128xf32>
      %cst_19 = arith.constant 9.99999974E-6 : f32
      %27 = vector.broadcast %cst_19 : f32 to vector<1x128xf32>
      %28 = arith.addf %24, %27 : vector<1x128xf32>
      %29 = math.rsqrt %28 : vector<1x128xf32>
      %30 = arith.mulf %25, %29 : vector<1x128xf32>
      %31 = vector.broadcast %30 : vector<1x128xf32> to vector<8x128xf32>
      %32 = arith.mulf %19, %31 : vector<8x128xf32>
      %33 = vector.broadcast %26 : vector<1x128xf32> to vector<8x128xf32>
      %34 = arith.addf %32, %33 : vector<8x128xf32>
      %cst_20 = arith.constant 0.000000e+00 : f32
      %35 = vector.broadcast %cst_20 : f32 to vector<8x128xf32>
      %36 = arith.cmpf oge, %34, %35 : vector<8x128xf32>
      %cst_21 = arith.constant 0.00999999977 : f32
      %37 = vector.broadcast %cst_21 : f32 to vector<8x128xf32>
      %38 = arith.mulf %37, %34 : vector<8x128xf32>
      %39 = arith.select %36, %34, %38 : vector<8x128xi1>, vector<8x128xf32>
      %c0_22 = arith.constant 0 : index
      %c0_23 = arith.constant 0 : index
      %40 = vector.load %arg5[%c0_22, %c0_23] : memref<8x128xf32, #tpu.memory_space<vmem>>, vector<8x128xf32>
      tpu.vector_store %arg5[%c0_22, %c0_23], %39 {strides = array<i32>} : memref<8x128xf32, #tpu.memory_space<vmem>>, vector<8x128xf32>,
    } else {
    }
    return
  }
  func.func @transform_0(%arg0: i32, %arg1: i32) -> (i32, i32) {
    %c0_i32 = arith.constant 0 : i32
    %c0_i32_0 = arith.constant 0 : i32
    return %c0_i32, %arg1 : i32, i32
  }
  func.func @transform_1(%arg0: i32, %arg1: i32) -> (i32, i32) {
    %c0_i32 = arith.constant 0 : i32
    return %arg1, %arg0 : i32, i32
  }
  func.func @transform_2(%arg0: i32, %arg1: i32) -> (i32, i32) {
    %c0_i32 = arith.constant 0 : i32
    %c0_i32_0 = arith.constant 0 : i32
    return %c0_i32, %arg0 : i32, i32
  }
  func.func @transform_3(%arg0: i32, %arg1: i32) -> (i32, i32) {
    %c0_i32 = arith.constant 0 : i32
    %c0_i32_0 = arith.constant 0 : i32
    return %c0_i32, %arg0 : i32, i32
  }
}

</mosaic_0001>

<bundles_post_ra>
// kernel: linear_block_pallas.1
= control target key start
LH: loop header
LB: loop body
LE: loop exit
PB: predicated region body
PF: predicated region fallthrough
CT: control target
= control target key end

     0   :  { %8 = vsyncpa [#allocation4], 0  ;;  %s367_s0 = inlined_call_operand.hbm [shape: f32[8,64], index: 0, kind: input, shape index: {}]   ;;  %s368_s1 = inlined_call_operand.hbm [shape: bf16[64,128], index: 1, kind: input, shape index: {}]   ;;  %s369_s2 = inlined_call_operand.vmem [shape: f32[2,128], index: 2, kind: input, shape index: {}]   ;;  %s370_s3 = inlined_call_operand.hbm [shape: f32[8,128], index: 3, kind: output, shape index: {}]  }
   0x1   :  { %9 = vsyncpa [#allocation7], 0 }
   0x2   :  { %10 = vsyncpa [#allocation5], 0  ;;  %s291_s12 = smov [#allocation3]   ;;  %s292_s14 = smov [#allocation6]  }
   0x3   :  { %s17_s13 = sshll.u32 %s291_s12, 4  ;;  %s26_s15 = sshll.u32 %s292_s14, 4  ;;  %s18_s13 = int_to_ptr.vmem [resolvable:$true] %s17_s13  ;;  %s318_s15 = int_to_ptr.vmem [resolvable:$true] %s26_s15 }
   0x4   :  { %s219_s18 = scalar_lea.hbm %s367_s0, 128 }
   0x5   :  { %p220_p0 = scmp.ne.s32.totalorder %s367_s0, %s219_s18  ;;  %p223_p1 = scmp.lt.u32.totalorder %s219_s18, %s367_s0 }
   0x7   :  { %p225_p2 = pnand %p223_p1, %p220_p0 }
   0x9   :  { %228 = shalt.err (!%p225_p2)
}
   0xa   :  { %s229_s23 = scalar_lea.vmem %s18_s13, 128  ;;  %p234_p4 = scmp.lt.s32.totalorder %s18_s13, %s18_s13 }
   0xb   :  { %p230_p3 = scmp.ne.s32.totalorder %s18_s13, %s229_s23  ;;  %p235_p5 = scmp.lt.s32.totalorder %s229_s23, %s229_s23 }
   0xd   :  { %p236_p6 = por %p235_p5, %p234_p4 }
   0xf   :  { %p237_p7 = pnand %p236_p6, %p230_p3 }
  0x11   :  { %240 = shalt.err (!%p237_p7)
}
  0x12   :  { %20 = dma.hbm_to_vmem [thread:$0]  %s367_s0, 128, %s18_s13, [#allocation4]  }
  0x13   :  { %s241_s28 = scalar_lea.hbm %s368_s1, 512 }
  0x14   :  { %p242_p8 = scmp.ne.s32.totalorder %s368_s1, %s241_s28  ;;  %p245_p9 = scmp.lt.u32.totalorder %s241_s28, %s368_s1 }
  0x16   :  { %p247_p10 = pnand %p245_p9, %p242_p8 }
  0x18   :  { %250 = shalt.err (!%p247_p10)
}
  0x19   :  { %s251_s6 = scalar_lea.vmem %s318_s15, 512  ;;  %p256_p12 = scmp.lt.s32.totalorder %s318_s15, %s318_s15 }
  0x1a   :  { %p252_p11 = scmp.ne.s32.totalorder %s318_s15, %s251_s6  ;;  %p257_p13 = scmp.lt.s32.totalorder %s251_s6, %s251_s6 }
  0x1c   :  { %p258_p0 = por %p257_p13, %p256_p12 }
  0x1e   :  { %p259_p1 = pnand %p258_p0, %p252_p11 }
  0x20   :  { %262 = shalt.err (!%p259_p1)
}
  0x21   :  { %s293_s0 = smov 64   ;;  %s294_s7 = smov 4  }
  0x22   :  { %32 = dma.hbm_to_vmem [thread:$0]  %s368_s1, 512, %s318_s15, [#allocation7], %s293_s0, %s293_s0, %s294_s7  }
  0x23   :  { %285 = dma.done.wait [#allocation4], 128  }
  0x24   :  { %286 = vsyncadd [#allocation4], 4294967168 }
  0x25   :  { %287 = dma.done.wait [#allocation7], 512  }
  0x26   :  { %288 = vsyncadd [#allocation7], 4294966784  ;;  %v295_v0 = vmov 0.0   ;;  %vm296_vm0 = vmmov 0   ;;  %v213_v1 = vld [vmem:[#allocation6] sm:$0xff]   ;;  %v214_v2 = vld [vmem:[#allocation6 + $0x8] sm:$0xff]   ;;  %v153_v28 = vlaneseq }
  0x27   :  { %194 = vmatprep.subr.bf16.mxu0 %v295_v0  ;;  %202 = vmatprep.mubr.msk.bf16.mxu0 %vm296_vm0, %v295_v0  ;;  %v215_v3 = vld [vmem:[#allocation6 + $0x10] sm:$0xff]   ;;  %v216_v4 = vld [vmem:[#allocation6 + $0x18] sm:$0xff]   ;;  %vm82_vm1 = vcmask 523264   ;;  %s297_s13 = smov [#allocation8]  }
  0x28   :  { %195 = vmatpush3.bf16.msra.mxu0 %v213_v1  ;;  %v48_v5 = vld [vmem:[#allocation3] sm:$0xff]  ;;  %v154_v29 = vshrl.u32 %v153_v28, 7  ;;  %s173_s14 = sshll.u32 %s297_s13, 4  ;;  %s174_s14 = int_to_ptr.vmem [resolvable:$true] %s173_s14 }
  0x29   :  { %196 = vmatprep.subr.bf16.mxu0 %v295_v0  ;;  %v49_v6 = vpack.c.bf16 %v48_v5, %v48_v5  ;;  %v148_v30 = vld [vmem:[%s369_s2] sm:$0x1]  ;;  %v188_v35 = vld [vmem:[%s369_s2 + $0x1] ss:$0 sm:$0xff]  ;;  %s263_s15 = scalar_lea.vmem %s174_s14, 128  ;;  %p268_p3 = scmp.lt.s32.totalorder %s174_s14, %s174_s14 }
  0x2a   :  { %v155_v31 = vsub.s32 0, %v154_v29  ;;  %p264_p2 = scmp.ne.s32.totalorder %s174_s14, %s263_s15  ;;  %p269_p4 = scmp.lt.s32.totalorder %s263_s15, %s263_s15 }
  0x2c   :  { %197 = vmatpush3.bf16.msra.mxu0 %v214_v2  ;;  %p270_p5 = por %p269_p4, %p268_p3 }
  0x2d   :  { %198 = vmatprep.subr.bf16.mxu0 %v295_v0 }
  0x2e   :  { %p271_p6 = pnand %p270_p5, %p264_p2 }
  0x30   :  { %199 = vmatpush3.bf16.msra.mxu0 %v215_v3 }
  0x31   :  { %200 = vmatprep.subr.bf16.mxu0 %v295_v0 }
  0x34   :  { %201 = vmatpush3.bf16.msra.mxu0 %v216_v4 }
  0x37   :  { %203 = vmatmul.mubr.msk.bf16.vlgmr.msra.gmra.mrb[0].mxu0 %vm82_vm1, %v49_v6 }
 0x10a   :  { %v120_v7 = vpop.f32.mrb[0].mxu0 }
 0x10b   :  { %v132_v8 = vrot.slane %v120_v7, 4  ;;  %v204_v9 = vpop.f32.mrb[1].mxu0 }
 0x10c   :  { %v123_v10 = vpop.f32.mrb[2].mxu0 }
 0x10d   :  { %v133_v11 = vadd.f32 %v132_v8, %v120_v7  ;;  %v205_v12 = vpop.f32.mrb[3].mxu0 }
 0x10f   :  { %v134_v13 = vrot.slane %v133_v11, 2 }
 0x111   :  { %v135_v14 = vadd.f32 %v134_v13, %v133_v11 }
 0x113   :  { %v136_v15 = vrot.slane %v135_v14, 1 }
 0x115   :  { %v137_v16 = vadd.f32 %v136_v15, %v135_v14 }
 0x117   :  { %v138_v17 = vmul.f32 0.125, %v137_v16 }
 0x119   :  { %v139_v18 = vsub.f32 %v120_v7, %v138_v17 }
 0x11b   :  { %v140_v19 = vmul.f32 %v139_v18, %v139_v18 }
 0x11d   :  { %v141_v20 = vrot.slane %v140_v19, 4 }
 0x11f   :  { %v142_v21 = vadd.f32 %v141_v20, %v140_v19 }
 0x121   :  { %v143_v22 = vrot.slane %v142_v21, 2 }
 0x123   :  { %v144_v23 = vadd.f32 %v143_v22, %v142_v21 }
 0x125   :  { %v145_v24 = vrot.slane %v144_v23, 1 }
 0x127   :  { %v146_v25 = vadd.f32 %v145_v24, %v144_v23 }
 0x129   :  { %v147_v26 = vmul.f32 0.125, %v146_v25 }
 0x12b   :  { %v150_v27 = vadd.f32 1e-05, %v147_v26 }
 0x12d   :  { %217 = vrsqrt.f32 %v150_v27 }
 0x137   :  { %v218_v32 = vpop.eup %217 }
 0x138   :  { %v152_v33 = vmul.f32 %v218_v32, %v148_v30 }
 0x13a   :  { %v156_v34 = vrot.slane %v152_v33, %v155_v31 }
 0x13c   :  { %v157_v36 = vmul.f32 %v156_v34, %v139_v18 }
 0x13e   :  { %v162_v37 = vadd.f32 %v188_v35, %v157_v36 }
 0x140   :  { %vm163_vm2 = vcmp.ge.f32.partialorder %v162_v37, 0.0  ;;  %v164_v38 = vmul.f32 0.01, %v162_v37 }
 0x142   :  { %v165_v39 = vsel %vm163_vm2, %v162_v37, %v164_v38 }
 0x143   :  { %166 = vst [vmem:[#allocation8] sm:$0xff] %v165_v39 }
 0x144   :  { %274 = shalt.err (!%p271_p6)
}
 0x145   :  { %s275_s2 = scalar_lea.hbm %s370_s3, 128 }
 0x146   :  { %p276_p7 = scmp.ne.s32.totalorder %s370_s3, %s275_s2  ;;  %p279_p8 = scmp.lt.u32.totalorder %s275_s2, %s370_s3 }
 0x148   :  { %p281_p9 = pnand %p279_p8, %p276_p7 }
 0x14a   :  { %284 = shalt.err (!%p281_p9)
}
 0x14b   :  { %176 = dma.vmem_to_hbm [thread:$0]  %s174_s14, 128, %s370_s3, [#allocation5]  }
 0x14c   :  { %289 = dma.done.wait [#allocation5], 128  }
 0x14d   :  { %290 = vsyncadd [#allocation5], 4294967168 }
 0x14e   :  { %180 = vsyncpa [#allocation4], 1 }
 0x14f   :  { %181 = vsyncpa [#allocation7], 1 }
 0x150   :  { %182 = vsyncpa [#allocation5], 1 }

</bundles_post_ra>
